<compile_context>
chip_gen: v7x
topology: tpu7x:2x2x1
jax: 0.10.0
libtpu: 0.0.40
codegen_flags: <defaults>
</compile_context>

<pallas_src>
import functools

import jax
import jax.numpy as jnp
from jax import lax
from jax.experimental import pallas as pl
from jax.experimental.pallas import tpu as pltpu


def _spatial_attention_kernel(x_ref, wf_ref, bs_ref, vs_ref, o_ref, *, T):
    f32 = jnp.float32
    Bt, N, K = x_ref.shape

    # --- One MXU matmul replaces both rank-1 contractions (W1/W2 and W3). ---
    # Wf rows are indexed by (f, t); columns [:T] give (x @ W1) @ W2, columns
    # [T:] give W3 @ x (see wrapper). Merge (Bt, N) into M for a plain 2D matmul.
    x2 = x_ref[...].reshape(Bt * N, K)
    proj = jnp.dot(x2, wf_ref[...], preferred_element_type=f32)   # (Bt*N, 2T)
    lhs = proj[:, :T].reshape(Bt, N, T)                           # (Bt, N, T)
    rhs = proj[:, T:].reshape(Bt, N, T)                           # (Bt, N, T) == (W3 @ x)

    # product[b, n, m] = sum_t lhs[b, n, t] * rhs[b, m, t]  (== lhs @ rhs^T, no transpose)
    product = lax.dot_general(lhs, rhs, (((2,), (2,)), ((0,), (0,))),
                              preferred_element_type=f32)          # (Bt, N, N)

    sig = jax.nn.sigmoid(product + bs_ref[...][None, :, :])        # (Bt, N, N), f32

    # S[b] = Vs @ sig[b]: broadcast Vs once per grid step so a single batched
    # dot_general yields (b, i, k) directly — no in-kernel transposes.
    vs_b = jnp.broadcast_to(vs_ref[...][None, :, :], (Bt, N, N))
    S = lax.dot_general(vs_b, sig, (((2,), (1,)), ((0,), (0,))),
                        preferred_element_type=f32)                # (Bt, N, N)

    # F.softmax(S, dim=1) on (B, N, N) == softmax over axis 1 per batch element.
    S = S - jnp.max(S, axis=1, keepdims=True)
    e = jnp.exp(S)
    denom = jnp.sum(e, axis=1, keepdims=True)                      # (Bt, 1, N)
    o_ref[...] = (e * pl.reciprocal(denom, approx=True)).astype(o_ref.dtype)


def _pick_block_b(B, N, K, itemsize):
    """How many batch elements each grid step processes."""
    if B <= 1:
        return max(B, 1)
    # VMEM budget for the double-buffered x block + f32 output block plus a few
    # (Bt, N, N) f32 intermediates -- conservative against v7x's 64 MiB VMEM.
    budget = 12 * 1024 * 1024
    per_b = 2 * N * K * itemsize + 2 * N * N * 4 + 6 * N * N * 4
    max_bt = max(1, budget // per_b)
    # Keep >= 2 grid steps so the "parallel" batch axis can be split across the
    # two TensorCores on v7x (a no-op on single-TC v5e / v6e).
    bt = min(max_bt, max(1, B // 2))
    # Largest divisor of B that is <= bt (avoids padded partial blocks).
    while B % bt:
        bt -= 1
    return bt


def spatial_attention(x, params, *, block_b=None):
    """x: (B, N, F_in, T) -> spatial attention scores (B, N, N)."""
    B, N, F, T = x.shape
    K = F * T
    f32 = jnp.float32

    # Keep x in its native dtype (no forced f32 upcast) and put F*T on lanes.
    x_flat = x.reshape(B, N, K)

    # Fuse W1/W2 and W3 into a single (F*T, 2T) weight:
    #   Wf[(f, t), t']      = W1[t] * W2[f, t']        -> lhs = (x @ W1) @ W2
    #   Wf[(f, t), T + t']  = W3[f] * delta(t, t')     -> rhs = W3 @ x
    W1 = params["W1"].astype(f32).reshape(T)
    W2 = params["W2"].astype(f32).reshape(F, T)
    W3 = params["W3"].astype(f32).reshape(F)
    a = (W1[None, :, None] * W2[:, None, :]).reshape(K, T)
    c = (W3[:, None, None] * jnp.eye(T, dtype=f32)[None, :, :]).reshape(K, T)
    Wf = jnp.concatenate([a, c], axis=1).astype(x_flat.dtype)       # (K, 2T)

    bs = params["bs"].reshape(N, N).astype(f32)
    Vs = params["Vs"].reshape(N, N).astype(f32)

    itemsize = jnp.dtype(x_flat.dtype).itemsize
    if block_b is None:
        block_b = _pick_block_b(B, N, K, itemsize)
    num_steps = B // block_b

    # VMEM budget: double-buffered x / out blocks + grid-invariant params +
    # in-kernel intermediates, capped well under v7x's 64 MiB physical VMEM.
    x_block = block_b * N * K * itemsize
    out_block = block_b * N * N * 4
    const_bytes = K * 2 * T * itemsize + 2 * N * N * 4
    vmem_need = 2 * (x_block + out_block) + 2 * const_bytes + 6 * out_block
    vmem_limit = int(min(48 << 20, max(vmem_need + (2 << 20), 32 << 20)))

    cost = pl.CostEstimate(
        flops=2 * B * N * K * 2 * T + 2 * B * N * N * T + 2 * B * N * N * N,
        transcendentals=2 * B * N * N,
        bytes_accessed=B * N * K * itemsize + const_bytes + B * N * N * 4,
    )

    kernel = functools.partial(_spatial_attention_kernel, T=T)

    out = pl.pallas_call(
        kernel,
        out_shape=jax.ShapeDtypeStruct((B, N, N), f32),
        grid_spec=pltpu.PrefetchScalarGridSpec(
            num_scalar_prefetch=0,
            grid=(num_steps,),
            in_specs=[
                pl.BlockSpec((block_b, N, K), lambda i: (i, 0, 0)),   # x (F*T on lanes)
                pl.BlockSpec((K, 2 * T), lambda i: (0, 0)),           # fused W1/W2/W3
                pl.BlockSpec((N, N), lambda i: (0, 0)),               # bs
                pl.BlockSpec((N, N), lambda i: (0, 0)),               # Vs
            ],
            out_specs=pl.BlockSpec((block_b, N, N), lambda i: (i, 0, 0)),
        ),
        compiler_params=pltpu.CompilerParams(
            dimension_semantics=("parallel",),
            vmem_limit_bytes=vmem_limit,
        ),
        cost_estimate=cost,
    )(x_flat, Wf, bs, Vs)
    return out


def spatial_attention_reference(x, params):
    """Pure-JAX mirror of the PyTorch forward (for validation)."""
    W1, W2, W3 = params["W1"], params["W2"], params["W3"]
    bs, Vs = params["bs"], params["Vs"]
    x = x.astype(jnp.float32)
    lhs = jnp.matmul(jnp.matmul(x, W1), W2)                  # (B, N, T)
    rhs = jnp.swapaxes(jnp.matmul(W3, x), -1, -2)            # (B, T, N)
    product = jnp.matmul(lhs, rhs)                           # (B, N, N)
    S = jnp.matmul(Vs, jax.nn.sigmoid(product + bs))         # (B, N, N)
    return jax.nn.softmax(S, axis=1)


if __name__ == "__main__":
    # x: (batch, num_of_vertices, in_channels, num_of_timesteps)
    B, N, F, T = 2, 16, 4, 8

    key = jax.random.PRNGKey(0)
    kx, k1, k2, k3, k4, k5 = jax.random.split(key, 6)
    x = jax.random.normal(kx, (B, N, F, T), dtype=jnp.float32)
    params = dict(
        W1=jax.random.uniform(k1, (T,), dtype=jnp.float32),
        W2=jax.random.uniform(k2, (F, T), dtype=jnp.float32),
        W3=jax.random.uniform(k3, (F,), dtype=jnp.float32),
        bs=jax.random.uniform(k4, (1, N, N), dtype=jnp.float32),
        Vs=jax.random.uniform(k5, (N, N), dtype=jnp.float32),
    )

    out = jax.block_until_ready(spatial_attention(x, params))
    ref = jax.block_until_ready(spatial_attention_reference(x, params))

    assert out.shape == (B, N, N), out.shape
    max_err = float(jnp.max(jnp.abs(out - ref)))
    assert jnp.allclose(out, ref, atol=2e-3, rtol=2e-3), max_err
    print("KERNEL_OK")
</pallas_src>

<mosaic_0001>
module attributes {stable_mosaic.version = 11 : i64} {
  func.func @_spatial_attention_kernel(%arg0: i32, %arg1: memref<1x16x32xf32, #tpu.memory_space<vmem>>, %arg2: memref<32x16xf32, #tpu.memory_space<vmem>>, %arg3: memref<16x16xf32, #tpu.memory_space<vmem>>, %arg4: memref<16x16xf32, #tpu.memory_space<vmem>>, %arg5: memref<1x16x16xf32, #tpu.memory_space<vmem>>) attributes {dimension_semantics = [#tpu.dimension_semantics<parallel>], iteration_bounds = array<i64: 2>, scalar_prefetch = 0 : i64, scratch_operands = 0 : i64, tpu.core_type = #tpu.core_type<tc>, window_params = [{transform_indices = @transform_0, window_bounds = array<i64: 1, 16, 32>}, {pipeline_mode = #tpu.pipeline_mode<synchronous>, transform_indices = @transform_1, window_bounds = array<i64: 32, 16>}, {pipeline_mode = #tpu.pipeline_mode<synchronous>, transform_indices = @transform_2, window_bounds = array<i64: 16, 16>}, {pipeline_mode = #tpu.pipeline_mode<synchronous>, transform_indices = @transform_3, window_bounds = array<i64: 16, 16>}, {transform_indices = @transform_4, window_bounds = array<i64: 1, 16, 16>}]} {
    %c0 = arith.constant 0 : index
    %c0_0 = arith.constant 0 : index
    %c0_1 = arith.constant 0 : index
    %0 = vector.load %arg1[%c0, %c0_0, %c0_1] : memref<1x16x32xf32, #tpu.memory_space<vmem>>, vector<1x16x32xf32>
    %1 = vector.shape_cast %0 : vector<1x16x32xf32> to vector<16x32xf32>
    %c0_2 = arith.constant 0 : index
    %c0_3 = arith.constant 0 : index
    %2 = vector.load %arg2[%c0_2, %c0_3] : memref<32x16xf32, #tpu.memory_space<vmem>>, vector<32x16xf32>
    %cst = arith.constant dense<0.000000e+00> : vector<16x16xf32>
    %3 = tpu.matmul %1, %2, %cst {dimension_numbers = #tpu.dot_dimension_numbers<[1], [0], [0], [1], [0, 0, 1, 1], [], []>} : vector<16x32xf32>, vector<32x16xf32>, vector<16x16xf32> -> vector<16x16xf32>
    %4 = vector.extract_strided_slice %3 {offsets = [0, 0], sizes = [16, 8], strides = [1, 1]} : vector<16x16xf32> to vector<16x8xf32>
    %5 = vector.shape_cast %4 : vector<16x8xf32> to vector<1x16x8xf32>
    %6 = vector.extract_strided_slice %3 {offsets = [0, 8], sizes = [16, 8], strides = [1, 1]} : vector<16x16xf32> to vector<16x8xf32>
    %7 = vector.shape_cast %6 : vector<16x8xf32> to vector<1x16x8xf32>
    %cst_4 = arith.constant dense<0.000000e+00> : vector<1x16x16xf32>
    %8 = tpu.matmul %5, %7, %cst_4 {dimension_numbers = #tpu.dot_dimension_numbers<[2], [2], [1], [1], [0, 0, 0, 1, 1, 1], [0], [0]>} : vector<1x16x8xf32>, vector<1x16x8xf32>, vector<1x16x16xf32> -> vector<1x16x16xf32>
    %c0_5 = arith.constant 0 : index
    %c0_6 = arith.constant 0 : index
    %9 = vector.load %arg3[%c0_5, %c0_6] : memref<16x16xf32, #tpu.memory_space<vmem>>, vector<16x16xf32>
    %10 = vector.shape_cast %9 : vector<16x16xf32> to vector<1x16x16xf32>
    %11 = arith.addf %8, %10 : vector<1x16x16xf32>
    %12 = arith.negf %11 : vector<1x16x16xf32>
    %13 = math.exp %12 : vector<1x16x16xf32>
    %cst_7 = arith.constant 1.000000e+00 : f32
    %14 = vector.broadcast %cst_7 : f32 to vector<1x16x16xf32>
    %15 = arith.addf %14, %13 : vector<1x16x16xf32>
    %16 = arith.divf %14, %15 : vector<1x16x16xf32>
    %c0_8 = arith.constant 0 : index
    %c0_9 = arith.constant 0 : index
    %17 = vector.load %arg4[%c0_8, %c0_9] : memref<16x16xf32, #tpu.memory_space<vmem>>, vector<16x16xf32>
    %18 = vector.shape_cast %17 : vector<16x16xf32> to vector<1x16x16xf32>
    %cst_10 = arith.constant dense<0.000000e+00> : vector<1x16x16xf32>
    %19 = tpu.matmul %18, %16, %cst_10 {dimension_numbers = #tpu.dot_dimension_numbers<[2], [1], [1], [2], [0, 0, 0, 1, 1, 2], [0], [0]>} : vector<1x16x16xf32>, vector<1x16x16xf32>, vector<1x16x16xf32> -> vector<1x16x16xf32>
    %cst_11 = arith.constant dense<0xFF800000> : vector<1x16xf32>
    %20 = vector.multi_reduction <maximumf>, %19, %cst_11 [1] : vector<1x16x16xf32> to vector<1x16xf32>
    %21 = vector.shape_cast %20 : vector<1x16xf32> to vector<1x1x16xf32>
    %22 = vector.broadcast %21 : vector<1x1x16xf32> to vector<1x16x16xf32>
    %23 = arith.subf %19, %22 : vector<1x16x16xf32>
    %24 = math.exp %23 : vector<1x16x16xf32>
    %cst_12 = arith.constant dense<0.000000e+00> : vector<1x16xf32>
    %25 = vector.multi_reduction <add>, %24, %cst_12 [1] : vector<1x16x16xf32> to vector<1x16xf32>
    %26 = vector.shape_cast %25 : vector<1x16xf32> to vector<1x1x16xf32>
    %27 = tpu.reciprocal %26 {approx = true} : vector<1x1x16xf32> -> vector<1x1x16xf32>
    %28 = vector.broadcast %27 : vector<1x1x16xf32> to vector<1x16x16xf32>
    %29 = arith.mulf %24, %28 : vector<1x16x16xf32>
    %c0_13 = arith.constant 0 : index
    %c0_14 = arith.constant 0 : index
    %c0_15 = arith.constant 0 : index
    %30 = vector.load %arg5[%c0_13, %c0_14, %c0_15] : memref<1x16x16xf32, #tpu.memory_space<vmem>>, vector<1x16x16xf32>
    tpu.vector_store %arg5[%c0_13, %c0_14, %c0_15], %29 {strides = array<i32>} : memref<1x16x16xf32, #tpu.memory_space<vmem>>, vector<1x16x16xf32>,
    return
  }
  func.func @transform_0(%arg0: i32) -> (i32, i32, i32) {
    %c0_i32 = arith.constant 0 : i32
    %c0_i32_0 = arith.constant 0 : i32
    %c0_i32_1 = arith.constant 0 : i32
    return %arg0, %c0_i32, %c0_i32_0 : i32, i32, i32
  }
  func.func @transform_1(%arg0: i32) -> (i32, i32) {
    %c0_i32 = arith.constant 0 : i32
    %c0_i32_0 = arith.constant 0 : i32
    %c0_i32_1 = arith.constant 0 : i32
    return %c0_i32, %c0_i32_0 : i32, i32
  }
  func.func @transform_2(%arg0: i32) -> (i32, i32) {
    %c0_i32 = arith.constant 0 : i32
    %c0_i32_0 = arith.constant 0 : i32
    %c0_i32_1 = arith.constant 0 : i32
    return %c0_i32, %c0_i32_0 : i32, i32
  }
  func.func @transform_3(%arg0: i32) -> (i32, i32) {
    %c0_i32 = arith.constant 0 : i32
    %c0_i32_0 = arith.constant 0 : i32
    %c0_i32_1 = arith.constant 0 : i32
    return %c0_i32, %c0_i32_0 : i32, i32
  }
  func.func @transform_4(%arg0: i32) -> (i32, i32, i32) {
    %c0_i32 = arith.constant 0 : i32
    %c0_i32_0 = arith.constant 0 : i32
    %c0_i32_1 = arith.constant 0 : i32
    return %arg0, %c0_i32, %c0_i32_0 : i32, i32, i32
  }
}

</mosaic_0001>

<bundles_post_ra>
// kernel: tpu_custom_call.1
= control target key start
LH: loop header
LB: loop body
LE: loop exit
PB: predicated region body
PF: predicated region fallthrough
CT: control target
= control target key end

     0   :  { %9 = vsyncpa [#allocation3], 0  ;;  %s1053_s0 = inlined_call_operand.vmem [shape: f32[2,16,32], index: 0, kind: input, shape index: {}]   ;;  %s1054_s1 = inlined_call_operand.vmem [shape: f32[32,16], index: 1, kind: input, shape index: {}]   ;;  %s1055_s2 = inlined_call_operand.vmem [shape: f32[16,16], index: 2, kind: input, shape index: {}]   ;;  %s1056_s3 = inlined_call_operand.hbm [shape: f32[16,16], index: 3, kind: input, shape index: {}]   ;;  %s1057_s4 = inlined_call_operand.hbm [shape: f32[2,16,16], index: 4, kind: output, shape index: {}]  }
   0x1   :  { %10 = vsyncpa [#allocation4], 0 }
   0x2   :  { %12 = vsyncpa [#allocation4 + $0x1], 0  ;;  %s889_s15 = smov 0   ;;  %s891_s16 = smov 0  }
   0x3   :  { %s893_s17 = smov 0   ;;  %s895_s18 = smov 0  }
   0x4 LB: > { %s910_s19 = sadd.s32 4294967295, %s855_s18   ;;  %s604_s20 = sadd.s32 4294967294, %s855_s18   ;;  %s855_s18 = sphi %s895_s18, %s1073_s18   ;;  %s851_s17 = sphi %s893_s17, %s1072_s17   ;;  %s847_s16 = sphi %s891_s16, %s1071_s16   ;;  %s843_s15 = sphi %s889_s15, %s1070_s15  }
   0x5   : > { %s914_s21 = sadd.s32 1, %s855_s18   ;;  %s114_s22 = sadd.s32 1, %s851_s17 }
   0x6   : > { %s111_s23 = ssub.s32 %s855_s18, %s914_s21  ;;  %p124_p0 = scmp.ne.s32.totalorder %s851_s17, %s847_s16 }
   0x7   : > { %p112_p1 = scmp.eq.s32.totalorder %s111_s23, 0  ;;  %p125_p2 = scmp.eq.s32.totalorder %s910_s19, 1 }
   0x8   : > { %p130_p3 = scmp.ne.s32.totalorder %s847_s16, %s843_s15  ;;  %p131_p4 = scmp.eq.s32.totalorder %s604_s20, 1 }
   0x9   : > { %s925_s24 = scalar_select %p112_p1, %s851_s17, %s114_s22  }
   0xa   : > { %p927_p5 = por %p125_p2, %p124_p0  ;;  %p931_p6 = por %p131_p4, %p130_p3 }
   0xb   : > { %p605_p7 = scmp.ge.s32.totalorder %s855_s18, 1  ;;  %p138_p8 = scmp.lt.s32.totalorder %s855_s18, 3 }
   0xc   : > { %s1061_s25 = scalar_select %p927_p5, 1, 0 }
   0xd   : > { %s1062_s26 = scalar_select %p931_p6, 1, 0 }
   0xe   : > { %p1058_p9 = scmp.eq.s32.totalorder %s910_s19, 0  ;;  %p938_p10 = pnand %p605_p7, %p138_p8 }
   0xf   : > { %s857_s28 = smov [#allocation2]   ;;  %s761_s7 = scalar_lea.hbm %s1056_s3, 256 }
  0x10   : > { %s1063_s27 = scalar_select %p938_p10, 1, 0 }
  0x11   : > { %s156_s29 = sshll.u32 %s857_s28, 4  ;;  %p693_p11 = pneg %p938_p10  ;;  %s157_s29 = int_to_ptr.vmem [resolvable:$true] %s156_s29 }
  0x12   : > { %p762_p13 = scmp.ne.s32.totalorder %s1056_s3, %s761_s7  ;;  %p768_p3 = scmp.lt.u32.totalorder %s761_s7, %s1056_s3 }
  0x13   : > { %p946_p12 = pnand %p1058_p9, %p693_p11 }
  0x15   : > { %p763_p0 = pneg %p946_p12 }
  0x17   : > { %p764_p1 = pnand %p763_p0, %p762_p13 }
  0x19   : > { %p765_p2 = pneg %p764_p1 }
  0x1b   : > { %p770_p4 = pnand %p768_p3, %p765_p2 }
  0x1d   : > { %773 = shalt.err (!%p770_p4)
}
  0x1e   : > { %s774_s12 = scalar_lea.vmem %s157_s29, 256  ;;  %p782_p9 = scmp.lt.s32.totalorder %s157_s29, %s157_s29 }
  0x1f   : > { %p775_p7 = scmp.ne.s32.totalorder %s157_s29, %s774_s12  ;;  %p783_p6 = scmp.lt.s32.totalorder %s774_s12, %s774_s12 }
  0x21   : > { %p777_p8 = pnand %p775_p7, %p763_p0  ;;  %p784_p5 = por %p783_p6, %p782_p9 }
  0x23   : > { %p778_p11 = pneg %p777_p8 }
  0x25   : > { %p785_p10 = pnand %p784_p5, %p778_p11 }
  0x27   : > { %788 = shalt.err (!%p785_p10)
}
  0x28   : > { %s858_s13 = smov 128   ;;  %s859_s14 = smov 8  }
  0x29   : > { %696 = dma.hbm_to_vmem [thread:$0]  (!%p946_p12), %s1056_s3, 256, %s157_s29, [#allocation3], %s858_s13, %s858_s13, %s859_s14  }
  0x2a   : > { %p1065_p13 = scmp.ne.s32.totalorder %s1063_s27, 0 }
  0x2b   : > { %p1066_p1 = scmp.eq.s32.totalorder (!%p1065_p13), %s910_s19, 0 }
  0x2c   : > { %180 = sbr.rel (%p1065_p13) target bundleno = 939 (0x3ab), region = 36 }
  0x33   : > { %834 = dma.done.wait (%p1066_p1), [#allocation3], 256   ;;  %p1067_p0 = pmov %p1066_p1 }
  0x34   : > { %p206_p5 = scmp.lt.s32.totalorder %s910_s19, 1  ;;  %vm217_vm0 = vcmask 261120   ;;  %v213_v0 = vld [vmem:[%s1054_s1] sm:$0xff]  ;;  %v214_v1 = vld [vmem:[%s1054_s1 + $0x8] sm:$0xff]  ;;  %v215_v2 = vld [vmem:[%s1054_s1 + $0x10] sm:$0xff]  ;;  %vm307_vm1 = vcmask 64512  }
  0x35   : > { %836 = vsyncadd (%p1067_p0), [#allocation3], 4294967040  ;;  %v669_v3 = vpack.c.bf16 %v214_v1, %v213_v0  ;;  %v216_v4 = vld [vmem:[%s1054_s1 + $0x18] sm:$0xff]  ;;  %s860_s13 = smov 120   ;;  %v403_v15 = vld [vmem:[#allocation2] sm:$0xff]  ;;  %vm405_vm3 = vcmask 130048  }
  0x36   : > { %s207_s23 = scalar_select %p206_p5, %s910_s19, 1  ;;  %v673_v6 = vpack.c.bf16 %v216_v4, %v215_v2  ;;  %vm678_vm2 = vmpackc.low %vm307_vm1, %vm307_vm1  ;;  %v300_v16 = vld [vmem:[%s1055_s2 + $0x8] sm:$0xff]  ;;  %v299_v17 = vld [vmem:[%s1055_s2] sm:$0xff] }
  0x37   : > { %670 = vmatprep.subr.bf16.mxu0 %v669_v3  ;;  %v404_v31 = vld [vmem:[#allocation2 + $0x8] sm:$0xff]  ;;  %s629_s30 = sshll.u32 %s910_s19, 8  ;;  %p1068_p9 = scmp.ne.s32.totalorder %s1061_s25, 0 }
  0x38   : > { %s628_s28 = sshll.u32 %s207_s23, 4  ;;  %672 = vmatpush3.bf16.msra.mxu0 %v669_v3  ;;  %s1006_s8 = scalar_lea.hbm %s1057_s4, %s629_s30 }
  0x39   : > { %s210_s6 = scalar_lea.vmem %s1053_s0, %s628_s28  ;;  %674 = vmatprep.subr.bf16.mxu0 %v673_v6  ;;  %s203_s28 = sand.u32 1, %s847_s16  }
  0x3a   : > { %v211_v5 = vld [vmem:[%s210_s6] sm:$0xff]  ;;  %v212_v7 = vld [vmem:[%s210_s6 + $0x8] sm:$0xff]  ;;  %s610_s5 = sshll.u32 %s203_s28, 4  ;;  %s1012_s19 = scalar_lea.sflag [#allocation4], %s203_s28 }
  0x3b   : > { %652 = vmatprep.mubr.msk.f32.mxu0 %vm217_vm0, %v211_v5  ;;  %s205_s6 = scalar_lea.vmem [#allocation5], %s610_s5  ;;  %s861_s10 = smov [#allocation5]  }
  0x3c   : > { %676 = vmatpush3.bf16.msra.mxu0 %v673_v6  ;;  %s530_s29 = sshll.u32 %s205_s6, 4  ;;  %s793_s11 = sshll.u32 %s861_s10, 4  ;;  %s1008_s29 = int_to_ptr.vmem [resolvable:$true] %s530_s29  ;;  %s794_s11 = int_to_ptr.vmem [resolvable:$false] %s793_s11 }
  0x3d   : > { %s789_s9 = scalar_lea.vmem %s1008_s29, 256  ;;  %s795_s12 = scalar_lea.vmem %s794_s11, 512 }
  0x3e   : > { %p790_p6 = scmp.ne.s32.totalorder %s1008_s29, %s789_s9  ;;  %p796_p2 = scmp.lt.s32.totalorder %s1008_s29, %s794_s11 }
  0x3f   : > { %653 = vmatmul.mubr.msk.f32.vlgmr.msra.gmra.mrb[0].mxu0 %vm217_vm0, %v212_v7  ;;  %p797_p3 = scmp.lt.s32.totalorder %s795_s12, %s789_s9 }
  0x40   : > { %666 = vmatprep.mubr.msk.f32.mxu0 %vm405_vm3, %v403_v15  ;;  %p791_p10 = pnand %p790_p6, %p1068_p9 }
  0x41   : > { %p798_p4 = por %p797_p3, %p796_p2 }
  0x42   : > { %p792_p12 = pneg %p791_p10 }
  0x44   : > { %p799_p7 = pnand %p798_p4, %p792_p12 }
 0x112   : > { %v654_v8 = vpop.f32.mrb[0].mxu0 }
 0x113   : > { %v290_v9 = vpop.f32.mrb[1].mxu0 }
 0x114   : > { %659 = vmatprep.mubr.msk.f32.mxu1 %vm307_vm1, %v290_v9  ;;  %v742_v10 = vpack.i.bf16 %v654_v8, %v290_v9 }
 0x116   : > { %743 = vrot.lane.b32.xlu0 %v742_v10, %s860_s13 }
 0x188   : > { %v744_v11 = vpop.permute.xlu0 %743 }
 0x189   : > { %v746_v12 = vunpack.i.h.bf16 %v744_v11  ;;  %v745_v13 = vunpack.i.l.bf16 %v744_v11 }
 0x18b   : > { %v677_v14 = vpack.c.bf16 %v746_v12, %v745_v13 }
 0x18d   : > { %679 = vmatprep.subr.msk.bf16.mxu1 %vm678_vm2, %v677_v14 }
 0x18e   : > { %682 = vmatpush3.bf16.xpose.msk.msra.mxu1 %vm678_vm2, %v677_v14 }
 0x195   : > { %660 = vmatmul.mubr.msk.f32.vlgmr.msra.gmra.mrb[0].mxu1 %vm307_vm1, %v654_v8 }
 0x268   : > { %v661_v18 = vpop.f32.mrb[0].mxu1 }
 0x269   : > { %v388_v19 = vadd.f32 %v661_v18, %v300_v16  ;;  %v382_v20 = vpop.f32.mrb[1].mxu1 }
 0x26a   : > { %v383_v21 = vadd.f32 %v382_v20, %v299_v17 }
 0x26b   : > { %v620_v22 = vmul.f32 -1.442695, %v388_v19 }
 0x26c   : > { %v619_v23 = vmul.f32 -1.442695, %v383_v21 }
 0x26d   : > { %747 = vpow2.f32 %v620_v22 }
 0x26e   : > { %749 = vpow2.f32 %v619_v23 }
 0x277   : > { %v748_v24 = vpop.eup %747 }
 0x278   : > { %v750_v25 = vpop.eup %749  ;;  %v398_v26 = vadd.f32 1.0, %v748_v24 }
 0x279   : > { %v397_v27 = vadd.f32 1.0, %v750_v25 }
 0x27a   : > { %751 = vrcp.f32 %v398_v26 }
 0x27b   : > { %753 = vrcp.f32 %v397_v27 }
 0x284   : > { %v752_v28 = vpop.eup %751 }
 0x285   : > { %v754_v29 = vpop.eup %753 }
 0x286   : > { %v683_v30 = vpack.c.bf16 %v752_v28, %v754_v29 }
 0x288   : > { %684 = vmatprep.subr.bf16.mxu0 %v683_v30 }
 0x289   : > { %686 = vmatpush3.bf16.msra.mxu0 %v683_v30 }
 0x28c   : > { %667 = vmatmul.mubr.msk.f32.vlgmr.msra.gmra.mrb[2].mxu0 %vm405_vm3, %v404_v31 }
 0x35f   : > { %v668_v32 = vpop.f32.mrb[2].mxu0 }
 0x360   : > { %v488_v33 = vsel %vm405_vm3, %v668_v32, -inf  ;;  %v478_v34 = vpop.f32.mrb[3].mxu0 }
 0x361   : > { %v487_v35 = vsel %vm405_vm3, %v478_v34, -inf }
 0x362   : > { %v489_v36 = vmax.f32 %v487_v35, %v488_v33 }
 0x364   : > { %v490_v37 = vrot.slane %v489_v36, 4 }
 0x366   : > { %v491_v38 = vmax.f32 %v489_v36, %v490_v37 }
 0x368   : > { %v492_v39 = vrot.slane %v491_v38, 2 }
 0x36a   : > { %v493_v40 = vmax.f32 %v491_v38, %v492_v39 }
 0x36c   : > { %v494_v41 = vrot.slane %v493_v40, 1 }
 0x36e   : > { %v495_v42 = vmax.f32 %v493_v40, %v494_v41 }
 0x370   : > { %v496_v43 = vsub.f32 %v478_v34, %v495_v42  ;;  %v497_v44 = vsub.f32 %v668_v32, %v495_v42 }
 0x372   : > { %v498_v45 = vmul.f32 1.442695, %v496_v43  ;;  %v500_v46 = vmul.f32 1.442695, %v497_v44 }
 0x374   : > { %755 = vpow2.f32 %v498_v45 }
 0x375   : > { %757 = vpow2.f32 %v500_v46 }
 0x37e   : > { %v756_v47 = vpop.eup %755 }
 0x37f   : > { %v758_v48 = vpop.eup %757  ;;  %v502_v49 = vsel %vm405_vm3, %v756_v47, 0.0 }
 0x380   : > { %v503_v50 = vsel %vm405_vm3, %v758_v48, 0.0 }
 0x381   : > { %v504_v51 = vadd.f32 %v503_v50, %v502_v49 }
 0x383   : > { %v505_v52 = vrot.slane %v504_v51, 4 }
 0x385   : > { %v506_v53 = vadd.f32 %v505_v52, %v504_v51 }
 0x387   : > { %v507_v54 = vrot.slane %v506_v53, 2 }
 0x389   : > { %v508_v55 = vadd.f32 %v507_v54, %v506_v53 }
 0x38b   : > { %v509_v56 = vrot.slane %v508_v55, 1 }
 0x38d   : > { %v510_v57 = vadd.f32 %v509_v56, %v508_v55 }
 0x38f   : > { %759 = vrcp.f32 %v510_v57 }
 0x399   : > { %v760_v58 = vpop.eup %759 }
 0x39a   : > { %v512_v59 = vmul.f32 %v760_v58, %v756_v47  ;;  %v513_v60 = vmul.f32 %v760_v58, %v758_v48 }
 0x39c   : > { %514 = vst.msk [vmem:[%s205_s6] sm:$0xff] %vm405_vm3, %v512_v59  ;;  %515 = vst.msk [vmem:[%s205_s6 + $0x8] sm:$0xff] %vm405_vm3, %v513_v60 }
 0x39d   : > { %802 = shalt.err (!%p799_p7)
}
 0x39e   : > { %s803_s13 = scalar_lea.hbm %s1006_s8, 256  ;;  %s807_s22 = scalar_lea.hbm %s1057_s4, 512 }
 0x39f   : > { %p804_p8 = scmp.ne.s32.totalorder %s1006_s8, %s803_s13  ;;  %p808_p1 = scmp.lt.u32.totalorder %s1006_s8, %s1057_s4 }
 0x3a0   : > { %p809_p0 = scmp.lt.u32.totalorder %s807_s22, %s803_s13  ;;  %p811_p6 = scmp.lt.u32.totalorder %s803_s13, %s1006_s8 }
 0x3a1   : > { %p805_p11 = pnand %p804_p8, %p1068_p9 }
 0x3a2   : > { %p810_p5 = por %p809_p0, %p808_p1 }
 0x3a3   : > { %p806_p13 = pneg %p805_p11 }
 0x3a4   : > { %p812_p10 = por %p811_p6, %p810_p5 }
 0x3a6   : > { %p813_p12 = pnand %p812_p10, %p806_p13 }
 0x3a8   : > { %816 = shalt.err (!%p813_p12)
}
 0x3a9   : > { %s862_s5 = smov 128   ;;  %s863_s30 = smov 8  }
 0x3aa   : > { %691 = dma.vmem_to_hbm [thread:$0]  (%p1068_p9), %s1008_s29, 256, %s1006_s8, %s1012_s19, %s862_s5, %s862_s5, %s863_s30  }
 0x3ab PF: > { %p703_p2 = scmp.ge.s32.totalorder %s855_s18, 2  ;;  %s545_s6 = sand.u32 1, %s843_s15  }
 0x3ac   : > { %p1069_p3 = scmp.ne.s32.totalorder %s1062_s26, 0  ;;  %s546_s7 = scalar_lea.sflag [#allocation4], %s545_s6 }
 0x3ae   : > { %p698_p4 = pnand %p703_p2, %p1069_p3 }
 0x3b0   : > { %838 = dma.done.wait (!%p698_p4), %s546_s7, 256  }
 0x3b1   : > { %840 = vsyncadd (!%p698_p4), %s546_s7, 4294967040  ;;  %p15_p7 = scmp.ge.s32.totalorder %s914_s21, 4   ;;  %s1070_s15 = smov %s847_s16 }
 0x3b2   : > { %s1071_s16 = smov %s851_s17  ;;  %s1072_s17 = smov %s925_s24 }
 0x3b3   : > { %s1073_s18 = smov %s914_s21  ;;  %17 = sbr.rel (!%p15_p7) target bundleno = 4 (0x4), region = 76 }
 0x3ba   :  { %551 = vsyncpa [#allocation3], 1 }
 0x3bb   :  { %553 = vsyncpa [#allocation3 + $0x1], 1 }
 0x3bc   :  { %554 = vsyncpa [#allocation4], 1 }
 0x3bd   :  { %556 = vsyncpa [#allocation4 + $0x1], 1 }

</bundles_post_ra>
